<compile_context>
chip_gen: v7x
topology: tpu7x:2x2x1
jax: 0.10.0
libtpu: 0.0.40
codegen_flags: <defaults>
</compile_context>

<pallas_src>
import functools

import numpy as np
import jax
import jax.numpy as jnp
from jax import lax
from jax.experimental import pallas as pl
from jax.experimental.pallas import tpu as pltpu


def _grb_kernel(x_ref, rhs1_ref, rhs2w_ref, rhs2h_ref, bias_ref, o_ref,
                *, kh, dil, pad_h, H, NB, WC):
    """One grid step = NB whole images; rows = NB*H (sublanes), lanes = W*C."""
    rows = NB * H
    x = x_ref[...]                                   # (rows, WC) f32
    x_bf = x.astype(jnp.bfloat16)

    # Row index within its own image, built from an in-kernel iota so nothing
    # non-scalar is captured as a kernel constant.
    row = lax.broadcasted_iota(jnp.int32, (rows, 1), 0)
    h_img = row % H

    def shift_rows(y, s):
        # out[r, :] = y[r + s, :] if row r+s lies inside the same image else 0
        # (implements the 'same' zero padding along H; also prevents mixing
        #  rows of different images when NB > 1).
        if s == 0:
            return y
        rolled = jnp.roll(y, -s, axis=0)             # sublane rotate
        valid = jnp.logical_and(h_img + s >= 0, h_img + s < H)
        return jnp.where(valid, rolled, 0.0)

    offs = [t * dil - pad_h for t in range(kh)]

    def tap_sum(y_wide, base):
        # y_wide[:, base + t*WC : base + (t+1)*WC] is tap t of a kH x 1 conv.
        acc = shift_rows(y_wide[:, base:base + WC], offs[0])
        for t in range(1, kh):
            lo = base + t * WC
            acc = acc + shift_rows(y_wide[:, lo:lo + WC], offs[t])
        return acc

    # ---- Stage 1: ONE wide MXU matmul covers conv_h(x) (branch_xy taps) and
    #      conv_w(x) (branch_yx). Output width = (kh+1)*WC.
    y1 = jnp.dot(x_bf, rhs1_ref[...], preferred_element_type=jnp.float32)
    h1_xy = tap_sum(y1, 0) + bias_ref[0:1, :]            # (rows, WC) f32
    w1_yx = y1[:, kh * WC:] + bias_ref[1:2, :]           # (rows, WC) f32

    # ---- Stage 2a: 1 x kW conv of branch_xy (banded lane-space matrix).
    out_xy = jnp.dot(h1_xy.astype(jnp.bfloat16), rhs2w_ref[...],
                     preferred_element_type=jnp.float32) + bias_ref[2:3, :]

    # ---- Stage 2b: kH x 1 conv of branch_yx: one kh*WC-wide matmul, then the
    #      shifted tap sum (shift/matmul commutation).
    y2 = jnp.dot(w1_yx.astype(jnp.bfloat16), rhs2h_ref[...],
                 preferred_element_type=jnp.float32)
    out_yx = tap_sum(y2, 0) + bias_ref[3:4, :]

    # final_activation is Activation.NONE -> identity.  Lane-dense full store.
    o_ref[...] = (x + out_xy + out_yx).astype(o_ref.dtype)


def _h_tap_blocks(w, W):
    """(kH, Cin, Cout) H-conv weights -> (W*C, kH*W*C).

    Tap t occupies output-lane block t and equals kron(I_W, w[t]) (pure
    channel mixing, no W mixing)."""
    eye = jnp.eye(W, dtype=w.dtype)
    return jnp.concatenate([jnp.kron(eye, w[t]) for t in range(w.shape[0])],
                           axis=1)


def _w_conv_matrix(w, W, dil, pad):
    """(kW, Cin, Cout) W-conv weights -> (W*C, W*C) banded conv matrix.

    Entry [w_src*C+ci, w_dst*C+co] = w[t, ci, co] with w_src = w_dst + t*dil - pad;
    out-of-range taps stay zero, implementing the 'same' zero padding."""
    k, C, _ = w.shape
    src = np.arange(W)[:, None]
    dst = np.arange(W)[None, :]
    m = jnp.zeros((W * C, W * C), w.dtype)
    for t in range(k):
        off = t * dil - pad
        sel = jnp.asarray((src == dst + off).astype(np.float32), dtype=w.dtype)
        m = m + jnp.kron(sel, w[t])
    return m


def _pick_batch_group(N, H, rows_per_block):
    """Largest NB with: N % NB == 0, NB*H <= rows_per_block, NB*H sublane
    aligned (or block == whole array), and >= 2 grid steps whenever N >= 2
    (keeps both v7x TensorCores busy and overlaps DMA with compute)."""
    cap = max(1, rows_per_block // H)
    for nb in range(min(N, cap), 0, -1):
        if N % nb:
            continue
        if (nb * H) % 8 != 0 and nb != N:
            continue
        if N >= 2 and N // nb < 2:
            continue
        return nb
    return N   # single full-array block (always layout-legal)


@functools.partial(jax.jit,
                   static_argnames=("kernel_shape", "dilation", "rows_per_block"))
def global_residual_block(x, params, kernel_shape, dilation=1,
                          *, rows_per_block=512):
    """x: (N, H, W, C) float32.  params: 8-tuple of weights/biases (see __main__)."""
    N, H, W, C = x.shape
    kh, kw = kernel_shape
    if kh % 2 == 0 or kw % 2 == 0:
        raise ValueError("kernel_shape must be odd for symmetric 'same' padding")
    pad_h = dilation * (kh - 1) // 2
    pad_w = dilation * (kw - 1) // 2
    WC = W * C

    wxy1, bxy1, wxy2, bxy2, wyx1, byx1, wyx2, byx2 = params

    # Lane-space weight matrices (construction is trace-cached by jax.jit).
    # MXU operands in bf16 (f32 accumulation in-kernel); biases stay f32.
    mxu_dtype = jnp.bfloat16
    rhs1 = jnp.concatenate(
        [_h_tap_blocks(wxy1, W),                        # branch_xy conv (kH,1)
         _w_conv_matrix(wyx1, W, dilation, pad_w)],     # branch_yx conv (1,kW)
        axis=1).astype(mxu_dtype)                       # (WC, (kh+1)*WC)
    rhs2_w = _w_conv_matrix(wxy2, W, dilation, pad_w).astype(mxu_dtype)   # (WC, WC)
    rhs2_h = _h_tap_blocks(wyx2, W).astype(mxu_dtype)                     # (WC, kh*WC)
    bias_pack = jnp.stack([jnp.tile(bxy1, W), jnp.tile(byx1, W),
                           jnp.tile(bxy2, W), jnp.tile(byx2, W)],
                          axis=0).astype(jnp.float32)                     # (4, WC)

    # Lane-dense I/O: fold batch into the row (sublane) axis.
    x2 = x.reshape(N * H, WC)

    NB = _pick_batch_group(N, H, rows_per_block)
    rows_blk = NB * H
    grid = (N // NB,)

    kernel = functools.partial(_grb_kernel, kh=kh, dil=dilation,
                               pad_h=pad_h, H=H, NB=NB, WC=WC)

    io_spec = pl.BlockSpec((rows_blk, WC), lambda g: (g, 0))

    def const_spec(arr):
        # Grid-invariant operand: constant index_map -> DMA'd only once.
        return pl.BlockSpec(arr.shape, lambda g: (0,) * arr.ndim)

    # Rough VMEM budget: double-buffered I/O tiles + weights + wide matmul
    # temporaries.  Only raise the scoped limit when the default might be too
    # small (kept None for small shapes so per-chip defaults apply).
    io_bytes = rows_blk * WC * 4
    wgt_bytes = (rhs1.size + rhs2_w.size + rhs2_h.size) * 2 + bias_pack.size * 4
    tmp_bytes = 2 * rows_blk * (kh + 1) * WC * 4
    est = 4 * io_bytes + 2 * wgt_bytes + tmp_bytes
    vmem_limit = None if est < 12 * 2**20 else min(int(est * 1.5), 64 * 2**20)

    flops = 2 * N * H * WC * (2 * kh + 2) * WC
    bytes_accessed = 2 * N * H * WC * 4 + wgt_bytes

    out2 = pl.pallas_call(
        kernel,
        out_shape=jax.ShapeDtypeStruct((N * H, WC), x.dtype),
        grid=grid,
        in_specs=[io_spec, const_spec(rhs1), const_spec(rhs2_w),
                  const_spec(rhs2_h), const_spec(bias_pack)],
        out_specs=io_spec,
        compiler_params=pltpu.CompilerParams(
            dimension_semantics=("parallel",),
            vmem_limit_bytes=vmem_limit),
        cost_estimate=pl.CostEstimate(flops=flops, transcendentals=0,
                                      bytes_accessed=bytes_accessed),
    )(x2, rhs1, rhs2_w, rhs2_h, bias_pack)

    return out2.reshape(N, H, W, C)


def _ref_forward(x, params, kernel_shape, dilation=1):
    """Pure-JAX f32 reference (matches the PyTorch module semantics, NHWC)."""
    wxy1, bxy1, wxy2, bxy2, wyx1, byx1, wyx2, byx2 = params

    def conv(inp, w, b, axis):
        k = w.shape[0]
        pad = dilation * (k - 1) // 2
        if axis == 1:   # along H: kernel (k, 1)
            rhs = w[:, None, :, :]              # (k, 1, Cin, Cout)  HWIO
            padding = ((pad, pad), (0, 0))
            rhs_dil = (dilation, 1)
        else:           # along W: kernel (1, k)
            rhs = w[None, :, :, :]              # (1, k, Cin, Cout)
            padding = ((0, 0), (pad, pad))
            rhs_dil = (1, dilation)
        out = lax.conv_general_dilated(
            inp, rhs, window_strides=(1, 1), padding=padding,
            rhs_dilation=rhs_dil,
            dimension_numbers=('NHWC', 'HWIO', 'NHWC'))
        return out + b.reshape(1, 1, 1, -1)

    branch_xy = conv(conv(x, wxy1, bxy1, axis=1), wxy2, bxy2, axis=2)
    branch_yx = conv(conv(x, wyx1, byx1, axis=2), wyx2, byx2, axis=1)
    return x + branch_xy + branch_yx


if __name__ == "__main__":
    # N=2, C=8, 16x16 spatial -> W*C = 128 (one lane width);
    # kernel_shape=(3, 5), dilation=1, Normalizer.NONE, Activation.NONE.
    N, H, W, C = 2, 16, 16, 8
    kh, kw = 3, 5
    dilation = 1

    key = jax.random.PRNGKey(0)
    ks = jax.random.split(key, 9)
    s = 0.1
    params = (
        jax.random.normal(ks[0], (kh, C, C), jnp.float32) * s,  # branch_xy conv (kH,1)
        jax.random.normal(ks[1], (C,), jnp.float32) * s,
        jax.random.normal(ks[2], (kw, C, C), jnp.float32) * s,  # branch_xy conv (1,kW)
        jax.random.normal(ks[3], (C,), jnp.float32) * s,
        jax.random.normal(ks[4], (kw, C, C), jnp.float32) * s,  # branch_yx conv (1,kW)
        jax.random.normal(ks[5], (C,), jnp.float32) * s,
        jax.random.normal(ks[6], (kh, C, C), jnp.float32) * s,  # branch_yx conv (kH,1)
        jax.random.normal(ks[7], (C,), jnp.float32) * s,
    )
    x = jax.random.normal(ks[8], (N, H, W, C), jnp.float32)

    out = global_residual_block(x, params, (kh, kw), dilation)
    out = jax.block_until_ready(out)

    ref = _ref_forward(x, params, (kh, kw), dilation)
    assert out.shape == (N, H, W, C)
    # Tolerance accounts for bf16 MXU operands (f32 accumulation); structural
    # errors (wrong tap/shift/bias routing) would be O(0.1) or larger.
    assert jnp.allclose(out, ref, rtol=3e-2, atol=3e-2), "mismatch vs reference"

    print("KERNEL_OK")
</pallas_src>

<mosaic_0001>
module attributes {stable_mosaic.version = 11 : i64} {
  func.func @_grb_kernel(%arg0: i32, %arg1: memref<16x128xf32, #tpu.memory_space<vmem>>, %arg2: memref<128x512xbf16, #tpu.memory_space<vmem>>, %arg3: memref<128x128xbf16, #tpu.memory_space<vmem>>, %arg4: memref<128x384xbf16, #tpu.memory_space<vmem>>, %arg5: memref<4x128xf32, #tpu.memory_space<vmem>>, %arg6: memref<16x128xf32, #tpu.memory_space<vmem>>) attributes {dimension_semantics = [#tpu.dimension_semantics<parallel>], iteration_bounds = array<i64: 2>, scalar_prefetch = 0 : i64, scratch_operands = 0 : i64, tpu.core_type = #tpu.core_type<tc>, window_params = [{transform_indices = @transform_0, window_bounds = array<i64: 16, 128>}, {pipeline_mode = #tpu.pipeline_mode<synchronous>, transform_indices = @transform_1, window_bounds = array<i64: 128, 512>}, {pipeline_mode = #tpu.pipeline_mode<synchronous>, transform_indices = @transform_2, window_bounds = array<i64: 128, 128>}, {pipeline_mode = #tpu.pipeline_mode<synchronous>, transform_indices = @transform_3, window_bounds = array<i64: 128, 384>}, {pipeline_mode = #tpu.pipeline_mode<synchronous>, transform_indices = @transform_4, window_bounds = array<i64: 4, 128>}, {transform_indices = @transform_5, window_bounds = array<i64: 16, 128>}]} {
    %c0 = arith.constant 0 : index
    %c0_0 = arith.constant 0 : index
    %0 = vector.load %arg1[%c0, %c0_0] : memref<16x128xf32, #tpu.memory_space<vmem>>, vector<16x128xf32>
    %1 = arith.truncf %0 : vector<16x128xf32> to vector<16x128xbf16>
    %2 = tpu.iota {dimensions = array<i32: 0>} : vector<16x1xi32>
    %c16_i32 = arith.constant 16 : i32
    %c0_i32 = arith.constant 0 : i32
    %3 = arith.cmpi eq, %c16_i32, %c0_i32 : i32
    %c1_i32 = arith.constant 1 : i32
    %4 = arith.select %3, %c1_i32, %c16_i32 : i32
    %5 = vector.broadcast %4 : i32 to vector<16x1xi32>
    %6 = arith.remsi %2, %5 : vector<16x1xi32>
    %c0_i32_1 = arith.constant 0 : i32
    %7 = vector.broadcast %c0_i32_1 : i32 to vector<16x1xi32>
    %8 = arith.cmpi ne, %6, %7 : vector<16x1xi32>
    %c0_i32_2 = arith.constant 0 : i32
    %9 = vector.broadcast %c0_i32_2 : i32 to vector<16x1xi32>
    %10 = arith.cmpi slt, %6, %9 : vector<16x1xi32>
    %c0_i32_3 = arith.constant 0 : i32
    %11 = arith.cmpi slt, %4, %c0_i32_3 : i32
    %12 = vector.broadcast %11 : i1 to vector<16x1xi1>
    %13 = vector.broadcast %12 : vector<16x1xi1> to vector<16x1xi1>
    %14 = arith.xori %10, %13 : vector<16x1xi1>
    %15 = arith.andi %14, %8 : vector<16x1xi1>
    %16 = vector.broadcast %4 : i32 to vector<16x1xi32>
    %17 = arith.addi %6, %16 : vector<16x1xi32>
    %18 = arith.select %15, %17, %6 : vector<16x1xi1>, vector<16x1xi32>
    %c0_4 = arith.constant 0 : index
    %c0_5 = arith.constant 0 : index
    %19 = vector.load %arg2[%c0_4, %c0_5] : memref<128x512xbf16, #tpu.memory_space<vmem>>, vector<128x512xbf16>
    %cst = arith.constant dense<0.000000e+00> : vector<16x512xf32>
    %20 = tpu.matmul %1, %19, %cst {dimension_numbers = #tpu.dot_dimension_numbers<[1], [0], [0], [1], [0, 0, 1, 1], [], []>} : vector<16x128xbf16>, vector<128x512xbf16>, vector<16x512xf32> -> vector<16x512xf32>
    %21 = vector.extract_strided_slice %20 {offsets = [0, 0], sizes = [16, 128], strides = [1, 1]} : vector<16x512xf32> to vector<16x128xf32>
    %22 = vector.extract_strided_slice %21 {offsets = [15, 0], sizes = [1, 128], strides = [1, 1]} : vector<16x128xf32> to vector<1x128xf32>
    %23 = vector.extract_strided_slice %21 {offsets = [0, 0], sizes = [15, 128], strides = [1, 1]} : vector<16x128xf32> to vector<15x128xf32>
    %24 = tpu.concatenate %22, %23 in 0 : vector<1x128xf32>, vector<15x128xf32> -> vector<16x128xf32>
    %c-1_i32 = arith.constant -1 : i32
    %25 = vector.broadcast %c-1_i32 : i32 to vector<16x1xi32>
    %26 = arith.addi %18, %25 : vector<16x1xi32>
    %c0_i32_6 = arith.constant 0 : i32
    %27 = vector.broadcast %c0_i32_6 : i32 to vector<16x1xi32>
    %28 = arith.cmpi sge, %26, %27 : vector<16x1xi32>
    %c-1_i32_7 = arith.constant -1 : i32
    %29 = vector.broadcast %c-1_i32_7 : i32 to vector<16x1xi32>
    %30 = arith.addi %18, %29 : vector<16x1xi32>
    %c16_i32_8 = arith.constant 16 : i32
    %31 = vector.broadcast %c16_i32_8 : i32 to vector<16x1xi32>
    %32 = arith.cmpi slt, %30, %31 : vector<16x1xi32>
    %33 = arith.andi %28, %32 : vector<16x1xi1>
    %cst_9 = arith.constant 0.000000e+00 : f32
    %34 = vector.shape_cast %33 : vector<16x1xi1> to vector<16x1xi1>
    %35 = vector.broadcast %34 : vector<16x1xi1> to vector<16x128xi1>
    %36 = vector.broadcast %cst_9 : f32 to vector<16x128xf32>
    %37 = arith.select %35, %24, %36 : vector<16x128xi1>, vector<16x128xf32>
    %38 = vector.extract_strided_slice %20 {offsets = [0, 128], sizes = [16, 128], strides = [1, 1]} : vector<16x512xf32> to vector<16x128xf32>
    %39 = arith.addf %37, %38 : vector<16x128xf32>
    %40 = vector.extract_strided_slice %20 {offsets = [0, 256], sizes = [16, 128], strides = [1, 1]} : vector<16x512xf32> to vector<16x128xf32>
    %41 = vector.extract_strided_slice %40 {offsets = [1, 0], sizes = [15, 128], strides = [1, 1]} : vector<16x128xf32> to vector<15x128xf32>
    %42 = vector.extract_strided_slice %40 {offsets = [0, 0], sizes = [1, 128], strides = [1, 1]} : vector<16x128xf32> to vector<1x128xf32>
    %43 = tpu.concatenate %41, %42 in 0 : vector<15x128xf32>, vector<1x128xf32> -> vector<16x128xf32>
    %c1_i32_10 = arith.constant 1 : i32
    %44 = vector.broadcast %c1_i32_10 : i32 to vector<16x1xi32>
    %45 = arith.addi %18, %44 : vector<16x1xi32>
    %c0_i32_11 = arith.constant 0 : i32
    %46 = vector.broadcast %c0_i32_11 : i32 to vector<16x1xi32>
    %47 = arith.cmpi sge, %45, %46 : vector<16x1xi32>
    %c1_i32_12 = arith.constant 1 : i32
    %48 = vector.broadcast %c1_i32_12 : i32 to vector<16x1xi32>
    %49 = arith.addi %18, %48 : vector<16x1xi32>
    %c16_i32_13 = arith.constant 16 : i32
    %50 = vector.broadcast %c16_i32_13 : i32 to vector<16x1xi32>
    %51 = arith.cmpi slt, %49, %50 : vector<16x1xi32>
    %52 = arith.andi %47, %51 : vector<16x1xi1>
    %cst_14 = arith.constant 0.000000e+00 : f32
    %53 = vector.shape_cast %52 : vector<16x1xi1> to vector<16x1xi1>
    %54 = vector.broadcast %53 : vector<16x1xi1> to vector<16x128xi1>
    %55 = vector.broadcast %cst_14 : f32 to vector<16x128xf32>
    %56 = arith.select %54, %43, %55 : vector<16x128xi1>, vector<16x128xf32>
    %57 = arith.addf %39, %56 : vector<16x128xf32>
    %c0_15 = arith.constant 0 : index
    %c0_16 = arith.constant 0 : index
    %58 = vector.load %arg5[%c0_15, %c0_16] : memref<4x128xf32, #tpu.memory_space<vmem>>, vector<1x128xf32>
    %59 = vector.broadcast %58 : vector<1x128xf32> to vector<16x128xf32>
    %60 = arith.addf %57, %59 : vector<16x128xf32>
    %61 = vector.extract_strided_slice %20 {offsets = [0, 384], sizes = [16, 128], strides = [1, 1]} : vector<16x512xf32> to vector<16x128xf32>
    %c1 = arith.constant 1 : index
    %c0_17 = arith.constant 0 : index
    %62 = vector.load %arg5[%c1, %c0_17] : memref<4x128xf32, #tpu.memory_space<vmem>>, vector<1x128xf32>
    %63 = vector.broadcast %62 : vector<1x128xf32> to vector<16x128xf32>
    %64 = arith.addf %61, %63 : vector<16x128xf32>
    %65 = arith.truncf %60 : vector<16x128xf32> to vector<16x128xbf16>
    %c0_18 = arith.constant 0 : index
    %c0_19 = arith.constant 0 : index
    %66 = vector.load %arg3[%c0_18, %c0_19] : memref<128x128xbf16, #tpu.memory_space<vmem>>, vector<128x128xbf16>
    %cst_20 = arith.constant dense<0.000000e+00> : vector<16x128xf32>
    %67 = tpu.matmul %65, %66, %cst_20 {dimension_numbers = #tpu.dot_dimension_numbers<[1], [0], [0], [1], [0, 0, 1, 1], [], []>} : vector<16x128xbf16>, vector<128x128xbf16>, vector<16x128xf32> -> vector<16x128xf32>
    %c2 = arith.constant 2 : index
    %c0_21 = arith.constant 0 : index
    %68 = vector.load %arg5[%c2, %c0_21] : memref<4x128xf32, #tpu.memory_space<vmem>>, vector<1x128xf32>
    %69 = vector.broadcast %68 : vector<1x128xf32> to vector<16x128xf32>
    %70 = arith.addf %67, %69 : vector<16x128xf32>
    %71 = arith.truncf %64 : vector<16x128xf32> to vector<16x128xbf16>
    %c0_22 = arith.constant 0 : index
    %c0_23 = arith.constant 0 : index
    %72 = vector.load %arg4[%c0_22, %c0_23] : memref<128x384xbf16, #tpu.memory_space<vmem>>, vector<128x384xbf16>
    %cst_24 = arith.constant dense<0.000000e+00> : vector<16x384xf32>
    %73 = tpu.matmul %71, %72, %cst_24 {dimension_numbers = #tpu.dot_dimension_numbers<[1], [0], [0], [1], [0, 0, 1, 1], [], []>} : vector<16x128xbf16>, vector<128x384xbf16>, vector<16x384xf32> -> vector<16x384xf32>
    %74 = vector.extract_strided_slice %73 {offsets = [0, 0], sizes = [16, 128], strides = [1, 1]} : vector<16x384xf32> to vector<16x128xf32>
    %75 = vector.extract_strided_slice %74 {offsets = [15, 0], sizes = [1, 128], strides = [1, 1]} : vector<16x128xf32> to vector<1x128xf32>
    %76 = vector.extract_strided_slice %74 {offsets = [0, 0], sizes = [15, 128], strides = [1, 1]} : vector<16x128xf32> to vector<15x128xf32>
    %77 = tpu.concatenate %75, %76 in 0 : vector<1x128xf32>, vector<15x128xf32> -> vector<16x128xf32>
    %c-1_i32_25 = arith.constant -1 : i32
    %78 = vector.broadcast %c-1_i32_25 : i32 to vector<16x1xi32>
    %79 = arith.addi %18, %78 : vector<16x1xi32>
    %c0_i32_26 = arith.constant 0 : i32
    %80 = vector.broadcast %c0_i32_26 : i32 to vector<16x1xi32>
    %81 = arith.cmpi sge, %79, %80 : vector<16x1xi32>
    %c-1_i32_27 = arith.constant -1 : i32
    %82 = vector.broadcast %c-1_i32_27 : i32 to vector<16x1xi32>
    %83 = arith.addi %18, %82 : vector<16x1xi32>
    %c16_i32_28 = arith.constant 16 : i32
    %84 = vector.broadcast %c16_i32_28 : i32 to vector<16x1xi32>
    %85 = arith.cmpi slt, %83, %84 : vector<16x1xi32>
    %86 = arith.andi %81, %85 : vector<16x1xi1>
    %cst_29 = arith.constant 0.000000e+00 : f32
    %87 = vector.shape_cast %86 : vector<16x1xi1> to vector<16x1xi1>
    %88 = vector.broadcast %87 : vector<16x1xi1> to vector<16x128xi1>
    %89 = vector.broadcast %cst_29 : f32 to vector<16x128xf32>
    %90 = arith.select %88, %77, %89 : vector<16x128xi1>, vector<16x128xf32>
    %91 = vector.extract_strided_slice %73 {offsets = [0, 128], sizes = [16, 128], strides = [1, 1]} : vector<16x384xf32> to vector<16x128xf32>
    %92 = arith.addf %90, %91 : vector<16x128xf32>
    %93 = vector.extract_strided_slice %73 {offsets = [0, 256], sizes = [16, 128], strides = [1, 1]} : vector<16x384xf32> to vector<16x128xf32>
    %94 = vector.extract_strided_slice %93 {offsets = [1, 0], sizes = [15, 128], strides = [1, 1]} : vector<16x128xf32> to vector<15x128xf32>
    %95 = vector.extract_strided_slice %93 {offsets = [0, 0], sizes = [1, 128], strides = [1, 1]} : vector<16x128xf32> to vector<1x128xf32>
    %96 = tpu.concatenate %94, %95 in 0 : vector<15x128xf32>, vector<1x128xf32> -> vector<16x128xf32>
    %c1_i32_30 = arith.constant 1 : i32
    %97 = vector.broadcast %c1_i32_30 : i32 to vector<16x1xi32>
    %98 = arith.addi %18, %97 : vector<16x1xi32>
    %c0_i32_31 = arith.constant 0 : i32
    %99 = vector.broadcast %c0_i32_31 : i32 to vector<16x1xi32>
    %100 = arith.cmpi sge, %98, %99 : vector<16x1xi32>
    %c1_i32_32 = arith.constant 1 : i32
    %101 = vector.broadcast %c1_i32_32 : i32 to vector<16x1xi32>
    %102 = arith.addi %18, %101 : vector<16x1xi32>
    %c16_i32_33 = arith.constant 16 : i32
    %103 = vector.broadcast %c16_i32_33 : i32 to vector<16x1xi32>
    %104 = arith.cmpi slt, %102, %103 : vector<16x1xi32>
    %105 = arith.andi %100, %104 : vector<16x1xi1>
    %cst_34 = arith.constant 0.000000e+00 : f32
    %106 = vector.shape_cast %105 : vector<16x1xi1> to vector<16x1xi1>
    %107 = vector.broadcast %106 : vector<16x1xi1> to vector<16x128xi1>
    %108 = vector.broadcast %cst_34 : f32 to vector<16x128xf32>
    %109 = arith.select %107, %96, %108 : vector<16x128xi1>, vector<16x128xf32>
    %110 = arith.addf %92, %109 : vector<16x128xf32>
    %c3 = arith.constant 3 : index
    %c0_35 = arith.constant 0 : index
    %111 = vector.load %arg5[%c3, %c0_35] : memref<4x128xf32, #tpu.memory_space<vmem>>, vector<1x128xf32>
    %112 = vector.broadcast %111 : vector<1x128xf32> to vector<16x128xf32>
    %113 = arith.addf %110, %112 : vector<16x128xf32>
    %114 = arith.addf %0, %70 : vector<16x128xf32>
    %115 = arith.addf %114, %113 : vector<16x128xf32>
    %c0_36 = arith.constant 0 : index
    %c0_37 = arith.constant 0 : index
    %116 = vector.load %arg6[%c0_36, %c0_37] : memref<16x128xf32, #tpu.memory_space<vmem>>, vector<16x128xf32>
    tpu.vector_store %arg6[%c0_36, %c0_37], %115 {strides = array<i32>} : memref<16x128xf32, #tpu.memory_space<vmem>>, vector<16x128xf32>,
    return
  }
  func.func @transform_0(%arg0: i32) -> (i32, i32) {
    %c0_i32 = arith.constant 0 : i32
    %c0_i32_0 = arith.constant 0 : i32
    return %arg0, %c0_i32 : i32, i32
  }
  func.func @transform_1(%arg0: i32) -> (i32, i32) {
    %c0_i32 = arith.constant 0 : i32
    %c0_i32_0 = arith.constant 0 : i32
    %c0_i32_1 = arith.constant 0 : i32
    return %c0_i32, %c0_i32_0 : i32, i32
  }
  func.func @transform_2(%arg0: i32) -> (i32, i32) {
    %c0_i32 = arith.constant 0 : i32
    %c0_i32_0 = arith.constant 0 : i32
    %c0_i32_1 = arith.constant 0 : i32
    return %c0_i32, %c0_i32_0 : i32, i32
  }
  func.func @transform_3(%arg0: i32) -> (i32, i32) {
    %c0_i32 = arith.constant 0 : i32
    %c0_i32_0 = arith.constant 0 : i32
    %c0_i32_1 = arith.constant 0 : i32
    return %c0_i32, %c0_i32_0 : i32, i32
  }
  func.func @transform_4(%arg0: i32) -> (i32, i32) {
    %c0_i32 = arith.constant 0 : i32
    %c0_i32_0 = arith.constant 0 : i32
    %c0_i32_1 = arith.constant 0 : i32
    return %c0_i32, %c0_i32_0 : i32, i32
  }
  func.func @transform_5(%arg0: i32) -> (i32, i32) {
    %c0_i32 = arith.constant 0 : i32
    %c0_i32_0 = arith.constant 0 : i32
    return %arg0, %c0_i32 : i32, i32
  }
}

</mosaic_0001>

<bundles_post_ra>
// kernel: tile.23
= control target key start
LH: loop header
LB: loop body
LE: loop exit
PB: predicated region body
PF: predicated region fallthrough
CT: control target
= control target key end

     0   :  { %s28_s0 = inlined_call_operand.vmem [shape: f32[8], index: 0, kind: input, shape index: {}]   ;;  %s29_s1 = inlined_call_operand.vmem [shape: f32[16,8], index: 1, kind: output, shape index: {}]  }
   0x1   :  { %v4_v0 = vld [vmem:[%s28_s0] ss:$0 sm:$0xff] }
   0x2   :  { %5 = vst [vmem:[%s29_s1] sm:$0xff] %v4_v0  ;;  %8 = vst [vmem:[%s29_s1 + $0x8] sm:$0xff] %v4_v0 }

// kernel: tile.36
= control target key start
LH: loop header
LB: loop body
LE: loop exit
PB: predicated region body
PF: predicated region fallthrough
CT: control target
= control target key end

     0   :  { %s131_s10 = smov 120   ;;  %s132_s11 = smov 104   ;;  %vm3_vm0 = vcmask 64512   ;;  %vm9_vm1 = vcmask 1048512   ;;  %vm15_vm2 = vcmask 982912   ;;  %vm21_vm3 = vcmask 917312   ;;  %s207_s0 = inlined_call_operand.vmem [shape: f32[16,8], index: 0, kind: input, shape index: {}]   ;;  %s208_s1 = inlined_call_operand.vmem [shape: f32[1,128], index: 1, kind: output, shape index: {}]  }
   0x1   :  { %v101_v0 = vld [vmem:[%s207_s0 + $0xf] sm:$0x1]   ;;  %v103_v1 = vld [vmem:[%s207_s0 + $0xd] sm:$0x1]   ;;  %v102_v2 = vld [vmem:[%s207_s0 + $0xe] sm:$0x1]  }
   0x2   :  { %7 = vrot.lane.b32.xlu0 %v101_v0, %s131_s10  ;;  %19 = vrot.lane.b32.xlu1 %v103_v1, %s132_s11  ;;  %v104_v3 = vld [vmem:[%s207_s0 + $0xc] sm:$0x1]   ;;  %s133_s16 = smov 112   ;;  %s134_s17 = smov 96   ;;  %v105_v4 = vld [vmem:[%s207_s0 + $0xb] sm:$0x1]  }
   0x3   :  { %v106_v5 = vld [vmem:[%s207_s0 + $0xa] sm:$0x1]   ;;  %v2_v6 = vld [vmem:[%s207_s0] sm:$0x1]   ;;  %s135_s24 = smov 88   ;;  %s136_s25 = smov 80  }
   0x4   :  { %4 = vst.msk [vmem:[#allocation0] sm:$0x1] %vm3_vm0, %v2_v6   ;;  %v107_v7 = vld [vmem:[%s207_s0 + $0x9] sm:$0x1]   ;;  %v108_v8 = vld [vmem:[%s207_s0 + $0x8] sm:$0x1]  }
   0x5   :  { %s137_s30 = smov 72   ;;  %s138_s2 = smov 64   ;;  %v109_v9 = vld [vmem:[%s207_s0 + $0x7] sm:$0x1]   ;;  %v110_v10 = vld [vmem:[%s207_s0 + $0x6] sm:$0x1]  }
   0x6   :  { %13 = vrot.lane.b32.xlu0 %v102_v2, %s133_s16  ;;  %25 = vrot.lane.b32.xlu1 %v104_v3, %s134_s17  ;;  %s139_s7 = smov 56   ;;  %s140_s8 = smov 48   ;;  %v111_v11 = vld [vmem:[%s207_s0 + $0x5] sm:$0x1]   ;;  %v112_v12 = vld [vmem:[%s207_s0 + $0x4] sm:$0x1]  }
   0x7   :  { %s141_s13 = smov 40   ;;  %s142_s14 = smov 32   ;;  %v113_v13 = vld [vmem:[%s207_s0 + $0x3] sm:$0x1]   ;;  %v114_v14 = vld [vmem:[%s207_s0 + $0x2] sm:$0x1]  }
   0x8   :  { %s143_s19 = smov 24   ;;  %s144_s20 = smov 16   ;;  %v115_v15 = vld [vmem:[%s207_s0 + $0x1] sm:$0x1]   ;;  %vm27_vm4 = vcmask 851712   ;;  %vm33_vm5 = vcmask 786112  }
   0x9   :  { %s145_s0 = smov 8   ;;  %vm39_vm6 = vcmask 720512   ;;  %vm45_vm7 = vcmask 654912   ;;  %vm51_vm8 = vcmask 589312   ;;  %vm57_vm9 = vcmask 523712  }
   0xa   :  { %31 = vrot.lane.b32.xlu0 %v105_v4, %s135_s24  ;;  %37 = vrot.lane.b32.xlu1 %v106_v5, %s136_s25  ;;  %vm63_vm10 = vcmask 458112   ;;  %vm69_vm11 = vcmask 392512   ;;  %vm75_vm12 = vcmask 326912   ;;  %vm81_vm13 = vcmask 261312  }
   0xb   :  { %vm87_vm14 = vcmask 195712   ;;  %vm93_vm15 = vcmask 130112  }
   0xe   :  { %43 = vrot.lane.b32.xlu0 %v107_v7, %s137_s30  ;;  %49 = vrot.lane.b32.xlu1 %v108_v8, %s138_s2 }
  0x12   :  { %55 = vrot.lane.b32.xlu0 %v109_v9, %s139_s7  ;;  %61 = vrot.lane.b32.xlu1 %v110_v10, %s140_s8 }
  0x16   :  { %67 = vrot.lane.b32.xlu0 %v111_v11, %s141_s13  ;;  %73 = vrot.lane.b32.xlu1 %v112_v12, %s142_s14 }
  0x1a   :  { %79 = vrot.lane.b32.xlu0 %v113_v13, %s143_s19  ;;  %85 = vrot.lane.b32.xlu1 %v114_v14, %s144_s20 }
  0x1e   :  { %91 = vrot.lane.b32.xlu0 %v115_v15, %s145_s0 }
  0x74   :  { %v8_v16 = vpop.permute.xlu0 %7   ;;  %v20_v17 = vpop.permute.xlu1 %19  }
  0x75   :  { %10 = vst.msk [vmem:[#allocation0] sm:$0x1] %vm9_vm1, %v8_v16  }
  0x78   :  { %v14_v18 = vpop.permute.xlu0 %13   ;;  %v26_v19 = vpop.permute.xlu1 %25  }
  0x79   :  { %16 = vst.msk [vmem:[#allocation0] sm:$0x1] %vm15_vm2, %v14_v18  }
  0x7a   :  { %22 = vst.msk [vmem:[#allocation0] sm:$0x1] %vm21_vm3, %v20_v17  }
  0x7b   :  { %28 = vst.msk [vmem:[#allocation0] sm:$0x1] %vm27_vm4, %v26_v19  }
  0x7c   :  { %v32_v20 = vpop.permute.xlu0 %31   ;;  %v38_v21 = vpop.permute.xlu1 %37  }
  0x7d   :  { %34 = vst.msk [vmem:[#allocation0] sm:$0x1] %vm33_vm5, %v32_v20  }
  0x7e   :  { %40 = vst.msk [vmem:[#allocation0] sm:$0x1] %vm39_vm6, %v38_v21  }
  0x80   :  { %v44_v22 = vpop.permute.xlu0 %43   ;;  %v50_v23 = vpop.permute.xlu1 %49  }
  0x81   :  { %46 = vst.msk [vmem:[#allocation0] sm:$0x1] %vm45_vm7, %v44_v22  }
  0x82   :  { %52 = vst.msk [vmem:[#allocation0] sm:$0x1] %vm51_vm8, %v50_v23  }
  0x84   :  { %v56_v24 = vpop.permute.xlu0 %55   ;;  %v62_v25 = vpop.permute.xlu1 %61  }
  0x85   :  { %58 = vst.msk [vmem:[#allocation0] sm:$0x1] %vm57_vm9, %v56_v24  }
  0x86   :  { %64 = vst.msk [vmem:[#allocation0] sm:$0x1] %vm63_vm10, %v62_v25  }
  0x88   :  { %v68_v26 = vpop.permute.xlu0 %67   ;;  %v74_v27 = vpop.permute.xlu1 %73  }
  0x89   :  { %70 = vst.msk [vmem:[#allocation0] sm:$0x1] %vm69_vm11, %v68_v26  }
  0x8a   :  { %76 = vst.msk [vmem:[#allocation0] sm:$0x1] %vm75_vm12, %v74_v27  }
  0x8c   :  { %v80_v28 = vpop.permute.xlu0 %79   ;;  %v86_v29 = vpop.permute.xlu1 %85  }
  0x8d   :  { %82 = vst.msk [vmem:[#allocation0] sm:$0x1] %vm81_vm13, %v80_v28  }
  0x8e   :  { %88 = vst.msk [vmem:[#allocation0] sm:$0x1] %vm87_vm14, %v86_v29  }
  0x90   :  { %v92_v30 = vpop.permute.xlu0 %91  }
  0x91   :  { %94 = vst.msk [vmem:[#allocation0] sm:$0x1] %vm93_vm15, %v92_v30  }
  0x98   :  { %v98_v31 = vld [vmem:[#allocation0] sm:$0x1] }
  0x99   :  { %100 = vst [vmem:[%s208_s1] sm:$0x1] %v98_v31 }

// kernel: global_residual_block.1
= control target key start
LH: loop header
LB: loop body
LE: loop exit
PB: predicated region body
PF: predicated region fallthrough
CT: control target
= control target key end

     0   :  { %s1331_s18 = smov 0   ;;  %s1614_s0 = inlined_call_operand.vmem [shape: f32[32,128], index: 0, kind: input, shape index: {}]   ;;  %s1615_s1 = inlined_call_operand.vmem [shape: bf16[128,512], index: 1, kind: input, shape index: {}]   ;;  %s1616_s2 = inlined_call_operand.vmem [shape: bf16[128,128], index: 2, kind: input, shape index: {}]   ;;  %s1617_s3 = inlined_call_operand.vmem [shape: bf16[128,384], index: 3, kind: input, shape index: {}]   ;;  %s1618_s4 = inlined_call_operand.vmem [shape: f32[4,128], index: 4, kind: input, shape index: {}]   ;;  %s1619_s5 = inlined_call_operand.vmem [shape: f32[32,128], index: 5, kind: output, shape index: {}]  }
   0x1 LB: > { %s1054_s19 = sadd.s32 4294967295, %s1296_s18   ;;  %p1058_p0 = scmp.ge.s32.totalorder %s1296_s18, 1  ;;  %s1296_s18 = sphi %s1331_s18, %s15_s18  }
   0x2   : > { %p188_p1 = scmp.lt.s32.totalorder %s1296_s18, 3 }
   0x4   : > { %p189_p2 = pnand %p1058_p0, %p188_p1 }
   0x5   : > { %v1202_v0 = vld [vmem:[%s1615_s1 + $0x4] ss:$16 sps:$4 sm:$0xff] (!%p189_p2)   ;;  %v1204_v1 = vld [vmem:[%s1615_s1 + $0xc] ss:$16 sps:$4 sm:$0xff] (!%p189_p2)   ;;  %v1298_v2 = vmov (!%p189_p2), 0   ;;  %s1059_s25 = sshll.u32 (!%p189_p2), %s1054_s19, 1  ;;  %v232_v61 = vlaneseq (!%p189_p2) }
   0x6   : > { %192 = sbr.rel (%p189_p2) target bundleno = 522 (0x20a), region = 40  ;;  %483 = vmatprep.mubr.bf16.mxu0 (!%p189_p2), %v1298_v2  ;;  %526 = vmatprep.mubr.bf16.mxu1 (!%p189_p2), %v1298_v2  ;;  %v1206_v3 = vld [vmem:[%s1615_s1] ss:$16 sps:$4 sm:$0xff] (!%p189_p2)   ;;  %v1207_v4 = vld [vmem:[%s1615_s1 + $0x8] ss:$16 sps:$4 sm:$0xff] (!%p189_p2)   ;;  %p217_p3 = scmp.lt.s32.totalorder (!%p189_p2), %s1059_s25, 3 }
   0x7   : > { %451 = vmatprep.subr.bf16.mxu0 (!%p189_p2), %v1202_v0  ;;  %494 = vmatprep.subr.bf16.mxu1 (!%p189_p2), %v1204_v1  ;;  %v1208_v5 = vld [vmem:[%s1615_s1 + $0x24] ss:$16 sps:$4 sm:$0xff] (!%p189_p2)   ;;  %v1210_v6 = vld [vmem:[%s1615_s1 + $0x2c] ss:$16 sps:$4 sm:$0xff] (!%p189_p2)   ;;  %v1212_v7 = vld [vmem:[%s1615_s1 + $0x20] ss:$16 sps:$4 sm:$0xff] (!%p189_p2)  }
   0x8   : > { %452 = vmatpush1.bf16.msra.mxu0 (!%p189_p2), %v1206_v3  ;;  %495 = vmatpush1.bf16.msra.mxu1 (!%p189_p2), %v1207_v4  ;;  %v1213_v8 = vld [vmem:[%s1615_s1 + $0x28] ss:$16 sps:$4 sm:$0xff] (!%p189_p2)   ;;  %v1214_v9 = vld [vmem:[%s1615_s1 + $0x44] ss:$16 sps:$4 sm:$0xff] (!%p189_p2)   ;;  %v1216_v10 = vld [vmem:[%s1615_s1 + $0x4c] ss:$16 sps:$4 sm:$0xff] (!%p189_p2)  }
   0x9   : > { %453 = vmatprep.subr.bf16.mxu0 (!%p189_p2), %v1208_v5  ;;  %496 = vmatprep.subr.bf16.mxu1 (!%p189_p2), %v1210_v6  ;;  %v1218_v11 = vld [vmem:[%s1615_s1 + $0x40] ss:$16 sps:$4 sm:$0xff] (!%p189_p2)   ;;  %v1219_v12 = vld [vmem:[%s1615_s1 + $0x48] ss:$16 sps:$4 sm:$0xff] (!%p189_p2)   ;;  %v1220_v13 = vld [vmem:[%s1615_s1 + $0x64] ss:$16 sps:$4 sm:$0xff] (!%p189_p2)  }
   0xa   : > { %v1222_v14 = vld [vmem:[%s1615_s1 + $0x6c] ss:$16 sps:$4 sm:$0xff] (!%p189_p2)   ;;  %v1224_v15 = vld [vmem:[%s1615_s1 + $0x60] ss:$16 sps:$4 sm:$0xff] (!%p189_p2)   ;;  %v1225_v16 = vld [vmem:[%s1615_s1 + $0x68] ss:$16 sps:$4 sm:$0xff] (!%p189_p2)  }
   0xb   : > { %v1226_v17 = vld [vmem:[%s1615_s1 + $0x84] ss:$16 sps:$4 sm:$0xff] (!%p189_p2)   ;;  %v1228_v18 = vld [vmem:[%s1615_s1 + $0x8c] ss:$16 sps:$4 sm:$0xff] (!%p189_p2)   ;;  %v1230_v19 = vld [vmem:[%s1615_s1 + $0x80] ss:$16 sps:$4 sm:$0xff] (!%p189_p2)  }
   0xc   : > { %454 = vmatpush1.bf16.msra.mxu0 (!%p189_p2), %v1212_v7  ;;  %497 = vmatpush1.bf16.msra.mxu1 (!%p189_p2), %v1213_v8  ;;  %v1231_v20 = vld [vmem:[%s1615_s1 + $0x88] ss:$16 sps:$4 sm:$0xff] (!%p189_p2)   ;;  %v1232_v21 = vld [vmem:[%s1615_s1 + $0xa4] ss:$16 sps:$4 sm:$0xff] (!%p189_p2)   ;;  %v1234_v22 = vld [vmem:[%s1615_s1 + $0xac] ss:$16 sps:$4 sm:$0xff] (!%p189_p2)  }
   0xd   : > { %455 = vmatprep.subr.bf16.mxu0 %v1214_v9  ;;  %498 = vmatprep.subr.bf16.mxu1 %v1216_v10  ;;  %s1621_s25 = smov (!%p217_p3, %s1059_s25), 3  ;;  %v1236_v23 = vld [vmem:[%s1615_s1 + $0xa0] ss:$16 sps:$4 sm:$0xff]   ;;  %v1237_v24 = vld [vmem:[%s1615_s1 + $0xa8] ss:$16 sps:$4 sm:$0xff]   ;;  %v1299_v40 = vmov 0.0  }
   0xe   : > { %v1238_v25 = vld [vmem:[%s1615_s1 + $0xc4] ss:$16 sps:$4 sm:$0xff]   ;;  %v1240_v26 = vld [vmem:[%s1615_s1 + $0xcc] ss:$16 sps:$4 sm:$0xff]   ;;  %s1060_s27 = sshll.u32 %s1621_s25, 3  ;;  %vm1300_vm0 = vmmov 0  }
   0xf   : > { %v1242_v27 = vld [vmem:[%s1615_s1 + $0xc0] ss:$16 sps:$4 sm:$0xff]   ;;  %v1243_v28 = vld [vmem:[%s1615_s1 + $0xc8] ss:$16 sps:$4 sm:$0xff]   ;;  %v1244_v29 = vld [vmem:[%s1615_s1 + $0xe4] ss:$16 sps:$4 sm:$0xff]   ;;  %s220_s10 = scalar_lea.vmem %s1614_s0, %s1060_s27  ;;  %s226_s29 = scalar_lea.vmem %s1619_s5, %s1060_s27 }
  0x10   : > { %456 = vmatpush1.bf16.msra.mxu0 %v1218_v11  ;;  %499 = vmatpush1.bf16.msra.mxu1 %v1219_v12  ;;  %v1246_v30 = vld [vmem:[%s1615_s1 + $0xec] ss:$16 sps:$4 sm:$0xff]   ;;  %v1248_v31 = vld [vmem:[%s1615_s1 + $0xe0] ss:$16 sps:$4 sm:$0xff]   ;;  %v1249_v32 = vld [vmem:[%s1615_s1 + $0xe8] ss:$16 sps:$4 sm:$0xff]  }
  0x11   : > { %457 = vmatprep.subr.bf16.mxu0 %v1220_v13  ;;  %500 = vmatprep.subr.bf16.mxu1 %v1222_v14  ;;  %v1447_v33 = vld [vmem:[%s220_s10] sm:$0xff]  ;;  %v1449_v34 = vld [vmem:[%s220_s10 + $0x8] sm:$0xff]  ;;  %v1257_v44 = vld [vmem:[%s1617_s3 + $0x30] ss:$12 sps:$4 sm:$0xff]   ;;  %v233_v62 = vshrl.u32 %v232_v61, 7  ;;  %vm541_vm1 = vcmask 1040384  }
  0x12   : > { %v1252_v35 = vld [vmem:[%s1617_s3 + $0x4] ss:$12 sps:$4 sm:$0xff]   ;;  %v231_v36 = vpack.c.bf16 %v1449_v34, %v1447_v33  ;;  %v1250_v37 = vld [vmem:[%s1617_s3] ss:$12 sps:$4 sm:$0xff]   ;;  %v1255_v39 = vld [vmem:[%s1617_s3 + $0x1c] ss:$12 sps:$4 sm:$0xff]  }
  0x13   : > { %v1256_v38 = vld [vmem:[%s1616_s2] sm:$0xff]   ;;  %v1260_v42 = vld [vmem:[%s1616_s2 + $0x8] sm:$0xff]   ;;  %v1264_v45 = vld [vmem:[%s1616_s2 + $0x10] sm:$0xff]   ;;  %v234_v63 = vadd.s32 8, %v233_v62  ;;  %v239_v0 = vand.u32 15, %v233_v62  ;;  %vm565_vm3 = vcmask 1046528  }
  0x14   : > { %458 = vmatpush1.bf16.msra.mxu0 %v1224_v15  ;;  %501 = vmatpush1.bf16.msra.mxu1 %v1225_v16  ;;  %v1253_v41 = vld [vmem:[%s1617_s3 + $0x18] ss:$12 sps:$4 sm:$0xff]   ;;  %v1259_v43 = vld [vmem:[%s1617_s3 + $0x34] ss:$12 sps:$4 sm:$0xff]   ;;  %v1271_v52 = vld [vmem:[%s1617_s3 + $0x7c] ss:$12 sps:$4 sm:$0xff]  }
  0x15   : > { %459 = vmatprep.subr.bf16.mxu0 %v1226_v17  ;;  %502 = vmatprep.subr.bf16.mxu1 %v1228_v18  ;;  %v1263_v46 = vld [vmem:[%s1617_s3 + $0x4c] ss:$12 sps:$4 sm:$0xff]   ;;  %v1261_v47 = vld [vmem:[%s1617_s3 + $0x48] ss:$12 sps:$4 sm:$0xff]   ;;  %v1267_v49 = vld [vmem:[%s1617_s3 + $0x64] ss:$12 sps:$4 sm:$0xff]  }
  0x16   : > { %v1268_v48 = vld [vmem:[%s1616_s2 + $0x18] sm:$0xff]   ;;  %v1265_v50 = vld [vmem:[%s1617_s3 + $0x60] ss:$12 sps:$4 sm:$0xff]   ;;  %v1277_v58 = vld [vmem:[%s1617_s3 + $0xa8] ss:$12 sps:$4 sm:$0xff]   ;;  %v246_v1 = vand.u32 15, %v234_v63 }
  0x17   : > { %v1272_v51 = vld [vmem:[%s1616_s2 + $0x20] sm:$0xff]   ;;  %v1273_v55 = vld [vmem:[%s1617_s3 + $0x90] ss:$12 sps:$4 sm:$0xff]   ;;  %v1276_v56 = vld [vmem:[%s1616_s2 + $0x28] sm:$0xff]  }
  0x18   : > { %460 = vmatpush1.bf16.msra.mxu0 %v1230_v19  ;;  %503 = vmatpush1.bf16.msra.mxu1 %v1231_v20  ;;  %v1269_v53 = vld [vmem:[%s1617_s3 + $0x78] ss:$12 sps:$4 sm:$0xff]   ;;  %v1275_v54 = vld [vmem:[%s1617_s3 + $0x94] ss:$12 sps:$4 sm:$0xff]   ;;  %v1542_v4 = vadd.s32 1, %v246_v1 }
  0x19   : > { %461 = vmatprep.subr.bf16.mxu0 %v1232_v21  ;;  %504 = vmatprep.subr.bf16.mxu1 %v1234_v22  ;;  %v1279_v57 = vld [vmem:[%s1617_s3 + $0xac] ss:$12 sps:$4 sm:$0xff]   ;;  %v1280_v59 = vld [vmem:[%s1616_s2 + $0x30] sm:$0xff]   ;;  %v1096_v3 = vld [vmem:[%s1618_s4 + $0x1] ss:$0 sm:$0xff] }
  0x1a   : > { %v1281_v60 = vld [vmem:[%s1616_s2 + $0x38] sm:$0xff]   ;;  %vm578_vm4 = vcmp.lt.s32.totalorder %v1542_v4, 16 }
  0x1c   : > { %462 = vmatpush1.bf16.msra.mxu0 %v1236_v23  ;;  %505 = vmatpush1.bf16.msra.mxu1 %v1237_v24 }
  0x1d   : > { %463 = vmatprep.subr.bf16.mxu0 %v1238_v25  ;;  %506 = vmatprep.subr.bf16.mxu1 %v1240_v26 }
  0x20   : > { %464 = vmatpush1.bf16.msra.mxu0 %v1242_v27  ;;  %507 = vmatpush1.bf16.msra.mxu1 %v1243_v28  ;;  %v1095_v28 = vld [vmem:[%s1618_s4] ss:$0 sm:$0xff] }
  0x21   : > { %465 = vmatprep.subr.bf16.mxu0 %v1244_v29  ;;  %508 = vmatprep.subr.bf16.mxu1 %v1246_v30 }
  0x24   : > { %466 = vmatpush1.bf16.msra.mxu0 %v1248_v31  ;;  %509 = vmatpush1.bf16.msra.mxu1 %v1249_v32 }
  0x25   : > { %875 = vmatprep.subr.bf16.mxu1 %v1252_v35  ;;  %1151 = vmatprep.subr.bf16.mxu0 %v1299_v40  ;;  %v1282_v35 = vld [vmem:[%s1617_s3 + $0x8] ss:$12 sps:$4 sm:$0xff]  }
  0x27   : > { %484 = vmatmul.mubr.bf16.vlgmr.msra.gmra.mrb[0].mxu0 %v231_v36  ;;  %527 = vmatmul.mubr.bf16.vlgmr.msra.gmra.mrb[0].mxu1 %v231_v36 }
  0x28   : > { %876 = vmatpush1.bf16.msra.mxu1 %v1250_v37  ;;  %1152 = vmatpush3.bf16.msra.mxu0 %v1256_v38  ;;  %v1283_v37 = vld [vmem:[%s1617_s3 + $0x20] ss:$12 sps:$4 sm:$0xff]   ;;  %v1284_v38 = vld [vmem:[%s1617_s3 + $0x38] ss:$12 sps:$4 sm:$0xff]  }
  0x29   : > { %877 = vmatprep.subr.bf16.mxu1 %v1255_v39  ;;  %1153 = vmatprep.subr.bf16.mxu0 %v1299_v40  ;;  %v1285_v39 = vld [vmem:[%s1617_s3 + $0x50] ss:$12 sps:$4 sm:$0xff]  }
  0x2a   : > { %907 = vmatprep.mubr.bf16.mxu1 %v1298_v2  ;;  %1167 = vmatprep.mubr.msk.bf16.mxu0 %vm1300_vm0, %v1299_v40  ;;  %v1537_v2 = vadd.s32 4294967295, %v239_v0 }
  0x2c   : > { %878 = vmatpush1.bf16.msra.mxu1 %v1253_v41  ;;  %1154 = vmatpush3.bf16.msra.mxu0 %v1260_v42  ;;  %vm549_vm2 = vcmp.ge.s32.totalorder %v1537_v2, 0  ;;  %v1286_v41 = vld [vmem:[%s1617_s3 + $0x68] ss:$12 sps:$4 sm:$0xff]   ;;  %v1287_v42 = vld [vmem:[%s1617_s3 + $0x80] ss:$12 sps:$4 sm:$0xff]  }
  0x2d   : > { %879 = vmatprep.subr.bf16.mxu1 %v1259_v43  ;;  %1155 = vmatprep.subr.bf16.mxu0 %v1299_v40  ;;  %v1288_v43 = vld [vmem:[%s1617_s3 + $0x98] ss:$12 sps:$4 sm:$0xff]  }
  0x30   : > { %880 = vmatpush1.bf16.msra.mxu1 %v1257_v44  ;;  %1156 = vmatpush3.bf16.msra.mxu0 %v1264_v45  ;;  %v1289_v44 = vld [vmem:[%s1617_s3 + $0xb0] ss:$12 sps:$4 sm:$0xff]  }
  0x31   : > { %881 = vmatprep.subr.bf16.mxu1 %v1263_v46  ;;  %1157 = vmatprep.subr.bf16.mxu0 %v1299_v40 }
  0x34   : > { %882 = vmatpush1.bf16.msra.mxu1 %v1261_v47  ;;  %1158 = vmatpush3.bf16.msra.mxu0 %v1268_v48 }
  0x35   : > { %883 = vmatprep.subr.bf16.mxu1 %v1267_v49  ;;  %1159 = vmatprep.subr.bf16.mxu0 %v1299_v40 }
  0x38   : > { %884 = vmatpush1.bf16.msra.mxu1 %v1265_v50  ;;  %1160 = vmatpush3.bf16.msra.mxu0 %v1272_v51 }
  0x39   : > { %885 = vmatprep.subr.bf16.mxu1 %v1271_v52  ;;  %1161 = vmatprep.subr.bf16.mxu0 %v1299_v40 }
  0x3c   : > { %886 = vmatpush1.bf16.msra.mxu1 %v1269_v53  ;;  %1162 = vmatpush3.bf16.msra.mxu0 %v1276_v56 }
  0x3d   : > { %887 = vmatprep.subr.bf16.mxu1 %v1275_v54  ;;  %1163 = vmatprep.subr.bf16.mxu0 %v1299_v40 }
  0x40   : > { %888 = vmatpush1.bf16.msra.mxu1 %v1273_v55  ;;  %1164 = vmatpush3.bf16.msra.mxu0 %v1280_v59 }
  0x41   : > { %889 = vmatprep.subr.bf16.mxu1 %v1279_v57  ;;  %1165 = vmatprep.subr.bf16.mxu0 %v1299_v40 }
  0x44   : > { %890 = vmatpush1.bf16.msra.mxu1 %v1277_v58  ;;  %1166 = vmatpush3.bf16.msra.mxu0 %v1281_v60  ;;  %v1097_v60 = vld [vmem:[%s1618_s4 + $0x2] ss:$0 sm:$0xff] }
  0x45   : > { %1171 = vmatprep.subr.bf16.mxu0 %v1299_v40 }
  0xfa   : > { %v485_v5 = vpop.f32.mrb[0].mxu0  ;;  %v528_v6 = vpop.f32.mrb[0].mxu1 }
  0xfb   : > { %v566_v7 = vrot.slane %v528_v6, 1  ;;  %v487_v8 = vpop.f32.mrb[1].mxu0  ;;  %v530_v9 = vpop.f32.mrb[1].mxu1  ;;  %v542_v13 = vrot.slane %v485_v5, 7 }
  0xfc   : > { %v601_v10 = vadd.f32 %v1096_v3, %v530_v9  ;;  %v489_v11 = vpop.f32.mrb[2].mxu0  ;;  %v532_v12 = vpop.f32.mrb[2].mxu1 }
  0xfd   : > { %v538_v14 = vrot.slane %v489_v11, 7  ;;  %v567_v15 = vrot.slane %v532_v12, 1  ;;  %v491_v16 = vpop.f32.mrb[3].mxu0  ;;  %v534_v17 = vpop.f32.mrb[3].mxu1 }
  0xfe   : > { %v602_v18 = vadd.f32 %v1096_v3, %v534_v17 }
  0xff   : > { %v546_v19 = vsel %vm541_vm1, %v538_v14, %v542_v13  ;;  %v568_v20 = vsel %vm565_vm3, %v566_v7, %v567_v15  ;;  %v543_v21 = vsel %vm541_vm1, %v542_v13, %v538_v14  ;;  %v572_v22 = vsel %vm565_vm3, %v567_v15, %v566_v7  ;;  %v1130_v7 = vld [vmem:[%s1618_s4 + $0x3] ss:$0 sm:$0xff] }
 0x100   : > { %v559_v23 = vsel %vm549_vm2, %v546_v19, 0.0  ;;  %v562_v24 = vadd.f32 %v543_v21, %v491_v16  ;;  %v586_v25 = vsel %vm578_vm4, %v572_v22, 0.0  ;;  %v714_v26 = vpack.c.bf16 %v602_v18, %v601_v10 }
 0x101   : > { %v561_v27 = vadd.f32 %v559_v23, %v487_v8 }
 0x102   : > { %v588_v29 = vadd.f32 %v586_v25, %v562_v24  ;;  %908 = vmatmul.mubr.bf16.vlgmr.msra.gmra.mrb[4].mxu1 %v714_v26 }
 0x103   : > { %v587_v30 = vadd.f32 %v568_v20, %v561_v27 }
 0x104   : > { %v595_v31 = vadd.f32 %v1095_v28, %v588_v29 }
 0x105   : > { %v594_v32 = vadd.f32 %v1095_v28, %v587_v30 }
 0x107   : > { %v603_v36 = vpack.c.bf16 %v595_v31, %v594_v32 }
 0x109   : > { %1168 = vmatmul.mubr.bf16.vlgmr.msra.gmra.mrb[4].mxu0 %v603_v36 }
 0x10a   : > { %1172 = vmatpush3.bf16.msra.mxu0 %v1282_v35  ;;  %1187 = vmatprep.mubr.msk.bf16.mxu0 %vm1300_vm0, %v1299_v40 }
 0x10b   : > { %1173 = vmatprep.subr.bf16.mxu0 %v1299_v40 }
 0x10e   : > { %1174 = vmatpush3.bf16.msra.mxu0 %v1283_v37 }
 0x10f   : > { %1175 = vmatprep.subr.bf16.mxu0 %v1299_v40 }
 0x112   : > { %1176 = vmatpush3.bf16.msra.mxu0 %v1284_v38 }
 0x113   : > { %1177 = vmatprep.subr.bf16.mxu0 %v1299_v40 }
 0x116   : > { %1178 = vmatpush3.bf16.msra.mxu0 %v1285_v39 }
 0x117   : > { %1179 = vmatprep.subr.bf16.mxu0 %v1299_v40 }
 0x11a   : > { %1180 = vmatpush3.bf16.msra.mxu0 %v1286_v41 }
 0x11b   : > { %1181 = vmatprep.subr.bf16.mxu0 %v1299_v40 }
 0x11e   : > { %1182 = vmatpush3.bf16.msra.mxu0 %v1287_v42 }
 0x11f   : > { %1183 = vmatprep.subr.bf16.mxu0 %v1299_v40 }
 0x122   : > { %1184 = vmatpush3.bf16.msra.mxu0 %v1288_v43 }
 0x123   : > { %1185 = vmatprep.subr.bf16.mxu0 %v1299_v40 }
 0x126   : > { %1186 = vmatpush3.bf16.msra.mxu0 %v1289_v44 }
 0x129   : > { %1188 = vmatmul.mubr.bf16.vlgmr.msra.gmra.mrb[8].mxu0 %v714_v26 }
 0x1d5   : > { %v909_v45 = vpop.f32.mrb[4].mxu1 }
 0x1d6   : > { %v911_v46 = vpop.f32.mrb[5].mxu1  ;;  %v963_v48 = vrot.slane %v909_v45, 7 }
 0x1d7   : > { %v913_v47 = vpop.f32.mrb[6].mxu1 }
 0x1d8   : > { %v960_v49 = vrot.slane %v913_v47, 7  ;;  %v915_v50 = vpop.f32.mrb[7].mxu1 }
 0x1da   : > { %v967_v51 = vsel %vm541_vm1, %v960_v49, %v963_v48  ;;  %v964_v52 = vsel %vm541_vm1, %v963_v48, %v960_v49 }
 0x1db   : > { %v968_v53 = vsel %vm549_vm2, %v967_v51, 0.0  ;;  %v971_v54 = vadd.f32 %v964_v52, %v915_v50 }
 0x1dc   : > { %v970_v55 = vadd.f32 %v968_v53, %v911_v46  ;;  %v707_v56 = vpop.f32.mrb[4].mxu0 }
 0x1dd   : > { %v1169_v57 = vpop.f32.mrb[5].mxu0  ;;  %v708_v3 = vadd.f32 %v1097_v60, %v707_v56 }
 0x1de   : > { %v710_v40 = vpop.f32.mrb[6].mxu0 }
 0x1df   : > { %v1170_v58 = vpop.f32.mrb[7].mxu0  ;;  %v711_v2 = vadd.f32 %v1097_v60, %v710_v40  ;;  %v992_v11 = vadd.f32 %v708_v3, %v1447_v33 }
 0x1e1   : > { %v993_v13 = vadd.f32 %v711_v2, %v1449_v34 }
 0x1fc   : > { %v952_v59 = vpop.f32.mrb[8].mxu0 }
 0x1fd   : > { %v1189_v61 = vpop.f32.mrb[9].mxu0  ;;  %v974_v63 = vrot.slane %v952_v59, 1 }
 0x1fe   : > { %v955_v62 = vpop.f32.mrb[10].mxu0 }
 0x1ff   : > { %v975_v0 = vrot.slane %v955_v62, 1  ;;  %v1190_v1 = vpop.f32.mrb[11].mxu0 }
 0x201   : > { %v976_v5 = vsel %vm565_vm3, %v974_v63, %v975_v0  ;;  %v980_v6 = vsel %vm565_vm3, %v975_v0, %v974_v63 }
 0x202   : > { %v982_v8 = vsel %vm578_vm4, %v980_v6, 0.0  ;;  %v983_v9 = vadd.f32 %v976_v5, %v970_v55 }
 0x203   : > { %v984_v10 = vadd.f32 %v982_v8, %v971_v54 }
 0x204   : > { %v990_v12 = vadd.f32 %v1130_v7, %v983_v9 }
 0x205   : > { %v991_v14 = vadd.f32 %v1130_v7, %v984_v10 }
 0x206   : > { %v994_v15 = vadd.f32 %v992_v11, %v990_v12 }
 0x207   : > { %v995_v16 = vadd.f32 %v993_v13, %v991_v14 }
 0x208   : > { %996 = vst [vmem:[%s226_s29] sm:$0xff] %v994_v15 }
 0x209   : > { %997 = vst [vmem:[%s226_s29 + $0x8] sm:$0xff] %v995_v16 }
 0x20a PF: > { %s15_s18 = sadd.s32 1, %s1296_s18  }
 0x20b   : > { %p12_p4 = scmp.ge.s32.totalorder %s15_s18, 4  }
 0x20d   :  { %14 = sbr.rel (!%p12_p4) target bundleno = 1 (0x1), region = 70 }

</bundles_post_ra>
